<compile_context>
chip_gen: v6e
topology: v6e:2x2x1
jax: 0.10.0
libtpu: 0.0.40
codegen_flags: <defaults>
</compile_context>

<pallas_src>
import functools

import jax
import jax.numpy as jnp
from jax import lax
from jax.experimental import pallas as pl
from jax.experimental.pallas import tpu as pltpu

CHUNK = 1024          # lane-chunk width processed per inner-loop iteration
TB_MAX = 131072       # max batch rows per grid step (~2.3 MiB HBM per step)


def _round_up(x: int, m: int) -> int:
    return ((x + m - 1) // m) * m


def mlp_kernel(xt_ref, w1_ref, b1_ref, w2_ref, b2_ref, o_ref):
    # xt_ref : [cpt, 8, CHUNK] bf16 -- batch on the lane axis, chunked on axis 0
    # w1_ref : [64, 8]  bf16        -- fc1 weight, PyTorch [out, in] layout
    # b1_ref : [64, 1]  f32
    # w2_ref : [64, 1]  f32         -- fc2 weight as a column (W2.T)
    # b2_ref : [1, 1]   f32
    # o_ref  : [cpt, 1, CHUNK] f32  -- lane-dense output chunks
    n_chunks = o_ref.shape[0]               # static (trace-time constant)

    # Hoist the (tiny) parameter loads out of the chunk loop.
    w1 = w1_ref[...]
    b1 = b1_ref[...]
    w2 = w2_ref[...]
    b2 = b2_ref[...]

    def chunk_body(c, carry):
        xc = xt_ref[c]                                              # [8, CHUNK]
        h = jnp.dot(w1, xc, preferred_element_type=jnp.float32)     # [64, CHUNK] (MXU)
        h = jnp.maximum(h + b1, 0.0)                                # bias + ReLU (f32, VPU)
        # fc2 has a single output feature: VPU multiply + sublane (XLU) reduce
        # instead of an MXU pass with N=1.
        y = jnp.sum(h * w2, axis=0, keepdims=True) + b2             # [1, CHUNK]
        o_ref[c] = y.astype(o_ref.dtype)
        return carry

    # Static unroll factor (kept a divisor of the trip count).
    if n_chunks <= 8:
        unroll = True
    else:
        unroll = next(u for u in (8, 4, 2, 1) if n_chunks % u == 0)
    lax.fori_loop(0, n_chunks, chunk_body, 0, unroll=unroll)


@functools.partial(jax.jit, static_argnames=("tb_max",))
def custom_nn_forward(x, w1, b1, w2, b2, *, tb_max=TB_MAX):
    """Forward pass of CustomNN.

    Args (PyTorch layouts):
      x : [B, 8] f32
      w1: [64, 8] f32, b1: [64] f32      (fc1)
      w2: [1, 64] f32, b2: [1]  f32      (fc2)
    Returns: [B, 1] f32
    """
    B = x.shape[0]

    # --- tile / padding arithmetic (all static Python ints) -----------------
    b_al = _round_up(max(B, 1), CHUNK)            # small alignment pad only
    num_tiles = max(2, pl.cdiv(b_al, tb_max))     # >= 2 grid steps ...
    num_tiles += num_tiles % 2                    # ... and even, for v7x's 2 TCs
    tb = _round_up(pl.cdiv(b_al, num_tiles), CHUNK)   # rows per grid step
    b_pad = num_tiles * tb
    cpt = tb // CHUNK                             # chunks per grid step
    nc_total = b_pad // CHUNK                     # total chunks

    # --- layout plumbing (single fused XLA pre-pass, not per-tile work) -----
    # NOTE: keeping x in [nc_total, 8, CHUNK] bf16 layout upstream (or fusing
    # this producer via CompilerParams(allow_input_fusion=...)) removes this
    # extra HBM pass entirely.
    x_bf = x.astype(jnp.bfloat16)
    x_pad = jnp.pad(x_bf, ((0, b_pad - B), (0, 0)))
    x_t = x_pad.reshape(nc_total, CHUNK, 8).transpose(0, 2, 1)   # [nc, 8, CHUNK]

    w1_b = w1.astype(jnp.bfloat16)                    # [64, 8]
    b1_c = b1.reshape(64, 1).astype(jnp.float32)      # [64, 1]
    w2_c = w2.reshape(64, 1).astype(jnp.float32)      # [64, 1] == W2.T
    b2_c = b2.reshape(1, 1).astype(jnp.float32)       # [1, 1]

    flops = 2 * b_pad * (8 * 64 + 64)
    bytes_accessed = (x_t.size * 2            # bf16 activations in
                      + b_pad * 4             # f32 output
                      + w1_b.size * 2 + (64 + 64 + 1) * 4)

    vmem = pltpu.MemorySpace.VMEM
    out3 = pl.pallas_call(
        mlp_kernel,
        out_shape=jax.ShapeDtypeStruct((nc_total, 1, CHUNK), jnp.float32),
        grid=(num_tiles,),
        in_specs=[
            pl.BlockSpec((cpt, 8, CHUNK), lambda i: (i, 0, 0), memory_space=vmem),
            pl.BlockSpec((64, 8), lambda i: (0, 0), memory_space=vmem),
            pl.BlockSpec((64, 1), lambda i: (0, 0), memory_space=vmem),
            pl.BlockSpec((64, 1), lambda i: (0, 0), memory_space=vmem),
            pl.BlockSpec((1, 1), lambda i: (0, 0), memory_space=vmem),
        ],
        out_specs=pl.BlockSpec((cpt, 1, CHUNK), lambda i: (i, 0, 0),
                               memory_space=vmem),
        compiler_params=pltpu.CompilerParams(
            dimension_semantics=("parallel",),        # shard tiles across TCs
            vmem_limit_bytes=32 * 1024 * 1024),       # explicit, fits all gens
        cost_estimate=pl.CostEstimate(
            flops=flops, transcendentals=0, bytes_accessed=bytes_accessed),
    )(x_t, w1_b, b1_c, w2_c, b2_c)

    # Back to the PyTorch-shaped [B, 1] output (drop batch padding).
    return out3.reshape(b_pad)[:B].reshape(B, 1)


def init_params(key):
    """Deterministic init mimicking nn.Linear's U(-1/sqrt(fan_in), 1/sqrt(fan_in)).

    Weights are stored in PyTorch's [out_features, in_features] layout.
    """
    k1, k2, k3, k4 = jax.random.split(key, 4)
    bound1 = 1.0 / jnp.sqrt(8.0)
    bound2 = 1.0 / jnp.sqrt(64.0)
    w1 = jax.random.uniform(k1, (64, 8), jnp.float32, -bound1, bound1)
    b1 = jax.random.uniform(k2, (64,), jnp.float32, -bound1, bound1)
    w2 = jax.random.uniform(k3, (1, 64), jnp.float32, -bound2, bound2)
    b2 = jax.random.uniform(k4, (1,), jnp.float32, -bound2, bound2)
    return w1, b1, w2, b2


if __name__ == "__main__":
    key = jax.random.PRNGKey(0)
    kx, kp = jax.random.split(key)

    B = 8  # small batch for the self-test (kernel pads internally to 2 tiles)
    x = jax.random.normal(kx, (B, 8), jnp.float32)
    w1, b1, w2, b2 = init_params(kp)

    out = custom_nn_forward(x, w1, b1, w2, b2)
    jax.block_until_ready(out)
    assert out.shape == (B, 1)

    hi = jax.lax.Precision.HIGHEST
    # Reference matching the kernel's bf16 MXU inputs (f32 accumulate).
    xb = x.astype(jnp.bfloat16).astype(jnp.float32)
    w1b = w1.astype(jnp.bfloat16).astype(jnp.float32)
    h_bf = jnp.maximum(jax.lax.dot(xb, w1b.T, precision=hi) + b1, 0.0)
    ref_bf = jax.lax.dot(h_bf, w2.T, precision=hi) + b2
    assert jnp.allclose(out, ref_bf, atol=1e-4, rtol=1e-4), (out, ref_bf)

    # Pure-f32 PyTorch-semantics reference (looser: kernel uses bf16 inputs).
    h_f32 = jnp.maximum(jax.lax.dot(x, w1.T, precision=hi) + b1, 0.0)
    ref = jax.lax.dot(h_f32, w2.T, precision=hi) + b2
    assert jnp.allclose(out, ref, atol=2e-2, rtol=2e-2), (out, ref)

    print("KERNEL_OK")
</pallas_src>

<mosaic_0001>
module attributes {stable_mosaic.version = 11 : i64} {
  func.func @mlp_kernel(%arg0: i32, %arg1: memref<1x8x1024xbf16, #tpu.memory_space<vmem>>, %arg2: memref<64x8xbf16, #tpu.memory_space<vmem>>, %arg3: memref<64x1xf32, #tpu.memory_space<vmem>>, %arg4: memref<64x1xf32, #tpu.memory_space<vmem>>, %arg5: memref<1x1xf32, #tpu.memory_space<vmem>>, %arg6: memref<1x1x1024xf32, #tpu.memory_space<vmem>>) attributes {dimension_semantics = [#tpu.dimension_semantics<parallel>], iteration_bounds = array<i64: 2>, scalar_prefetch = 0 : i64, scratch_operands = 0 : i64, tpu.core_type = #tpu.core_type<tc>, window_params = [{transform_indices = @transform_0, window_bounds = array<i64: 1, 8, 1024>}, {pipeline_mode = #tpu.pipeline_mode<synchronous>, transform_indices = @transform_1, window_bounds = array<i64: 64, 8>}, {pipeline_mode = #tpu.pipeline_mode<synchronous>, transform_indices = @transform_2, window_bounds = array<i64: 64, 1>}, {pipeline_mode = #tpu.pipeline_mode<synchronous>, transform_indices = @transform_3, window_bounds = array<i64: 64, 1>}, {pipeline_mode = #tpu.pipeline_mode<synchronous>, transform_indices = @transform_4, window_bounds = array<i64: 1, 1>}, {transform_indices = @transform_5, window_bounds = array<i64: 1, 1, 1024>}]} {
    %c0 = arith.constant 0 : index
    %c0_0 = arith.constant 0 : index
    %0 = vector.load %arg2[%c0, %c0_0] : memref<64x8xbf16, #tpu.memory_space<vmem>>, vector<64x8xbf16>
    %c0_1 = arith.constant 0 : index
    %c0_2 = arith.constant 0 : index
    %1 = vector.load %arg3[%c0_1, %c0_2] : memref<64x1xf32, #tpu.memory_space<vmem>>, vector<64x1xf32>
    %c0_3 = arith.constant 0 : index
    %c0_4 = arith.constant 0 : index
    %2 = vector.load %arg4[%c0_3, %c0_4] : memref<64x1xf32, #tpu.memory_space<vmem>>, vector<64x1xf32>
    %c0_5 = arith.constant 0 : index
    %c0_6 = arith.constant 0 : index
    %3 = vector.load %arg5[%c0_5, %c0_6] : memref<1x1xf32, #tpu.memory_space<vmem>>, vector<1x1xf32>
    %c0_i32 = arith.constant 0 : i32
    %4 = arith.index_cast %c0_i32 : i32 to index
    %c0_7 = arith.constant 0 : index
    %c0_8 = arith.constant 0 : index
    %5 = vector.load %arg1[%4, %c0_7, %c0_8] : memref<1x8x1024xbf16, #tpu.memory_space<vmem>>, vector<1x8x1024xbf16>
    %6 = vector.shape_cast %5 : vector<1x8x1024xbf16> to vector<8x1024xbf16>
    %cst = arith.constant dense<0.000000e+00> : vector<64x1024xf32>
    %7 = tpu.matmul %0, %6, %cst {dimension_numbers = #tpu.dot_dimension_numbers<[1], [0], [0], [1], [0, 0, 1, 1], [], []>} : vector<64x8xbf16>, vector<8x1024xbf16>, vector<64x1024xf32> -> vector<64x1024xf32>
    %8 = vector.broadcast %1 : vector<64x1xf32> to vector<64x1024xf32>
    %9 = arith.addf %7, %8 : vector<64x1024xf32>
    %cst_9 = arith.constant 0.000000e+00 : f32
    %10 = vector.broadcast %cst_9 : f32 to vector<64x1024xf32>
    %11 = arith.maximumf %9, %10 : vector<64x1024xf32>
    %12 = vector.broadcast %2 : vector<64x1xf32> to vector<64x1024xf32>
    %13 = arith.mulf %11, %12 : vector<64x1024xf32>
    %cst_10 = arith.constant dense<0.000000e+00> : vector<1024xf32>
    %14 = vector.multi_reduction <add>, %13, %cst_10 [0] : vector<64x1024xf32> to vector<1024xf32>
    %15 = vector.shape_cast %14 : vector<1024xf32> to vector<1x1024xf32>
    %16 = vector.broadcast %3 : vector<1x1xf32> to vector<1x1024xf32>
    %17 = arith.addf %15, %16 : vector<1x1024xf32>
    %18 = arith.index_cast %c0_i32 : i32 to index
    %c0_11 = arith.constant 0 : index
    %c0_12 = arith.constant 0 : index
    %19 = vector.load %arg6[%18, %c0_11, %c0_12] : memref<1x1x1024xf32, #tpu.memory_space<vmem>>, vector<1x1x1024xf32>
    %20 = vector.shape_cast %19 : vector<1x1x1024xf32> to vector<1x1024xf32>
    %21 = vector.shape_cast %17 : vector<1x1024xf32> to vector<1x1x1024xf32>
    tpu.vector_store %arg6[%18, %c0_11, %c0_12], %21 {strides = array<i32>} : memref<1x1x1024xf32, #tpu.memory_space<vmem>>, vector<1x1x1024xf32>,
    %c1_i32 = arith.constant 1 : i32
    return
  }
  func.func @transform_0(%arg0: i32) -> (i32, i32, i32) {
    %c0_i32 = arith.constant 0 : i32
    %c0_i32_0 = arith.constant 0 : i32
    %c0_i32_1 = arith.constant 0 : i32
    return %arg0, %c0_i32, %c0_i32_0 : i32, i32, i32
  }
  func.func @transform_1(%arg0: i32) -> (i32, i32) {
    %c0_i32 = arith.constant 0 : i32
    %c0_i32_0 = arith.constant 0 : i32
    %c0_i32_1 = arith.constant 0 : i32
    return %c0_i32, %c0_i32_0 : i32, i32
  }
  func.func @transform_2(%arg0: i32) -> (i32, i32) {
    %c0_i32 = arith.constant 0 : i32
    %c0_i32_0 = arith.constant 0 : i32
    %c0_i32_1 = arith.constant 0 : i32
    return %c0_i32, %c0_i32_0 : i32, i32
  }
  func.func @transform_3(%arg0: i32) -> (i32, i32) {
    %c0_i32 = arith.constant 0 : i32
    %c0_i32_0 = arith.constant 0 : i32
    %c0_i32_1 = arith.constant 0 : i32
    return %c0_i32, %c0_i32_0 : i32, i32
  }
  func.func @transform_4(%arg0: i32) -> (i32, i32) {
    %c0_i32 = arith.constant 0 : i32
    %c0_i32_0 = arith.constant 0 : i32
    %c0_i32_1 = arith.constant 0 : i32
    return %c0_i32, %c0_i32_0 : i32, i32
  }
  func.func @transform_5(%arg0: i32) -> (i32, i32, i32) {
    %c0_i32 = arith.constant 0 : i32
    %c0_i32_0 = arith.constant 0 : i32
    %c0_i32_1 = arith.constant 0 : i32
    return %arg0, %c0_i32, %c0_i32_0 : i32, i32, i32
  }
}

</mosaic_0001>

<bundles_post_ra>
// kernel: custom_nn_forward.1
= control target key start
LH: loop header
LB: loop body
LE: loop exit
PB: predicated region body
PF: predicated region fallthrough
CT: control target
= control target key end

     0   :  { %s1176_s20 = smov 0   ;;  %s1481_s0 = inlined_call_operand.vmem [shape: bf16[2,8,1024], index: 0, kind: input, shape index: {}]   ;;  %s1482_s1 = inlined_call_operand.vmem [shape: bf16[64,8], index: 1, kind: input, shape index: {}]   ;;  %s1483_s2 = inlined_call_operand.vmem [shape: f32[64,1], index: 2, kind: input, shape index: {}]   ;;  %s1484_s3 = inlined_call_operand.vmem [shape: f32[64,1], index: 3, kind: input, shape index: {}]   ;;  %s1485_s4 = inlined_call_operand.<no memory space> [shape: f32[1,1], index: 4, kind: input, shape index: {}]   ;;  %s1486_s5 = inlined_call_operand.vmem [shape: f32[2,1,1024], index: 5, kind: output, shape index: {}]  }
   0x1   :  { %v10_v0 = vstv %s1485_s4 }
   0x2   :  { %11 = vst [vmem:[#allocation2] sm:$0x1] %v10_v0 }
   0x3 LB: > { %s1066_s21 = sadd.s32 4294967295, %s1139_s20   ;;  %p1070_p0 = scmp.ge.s32.totalorder %s1139_s20, 1  ;;  %s1139_s20 = sphi %s1176_s20, %s17_s20  }
   0x4   : > { %p189_p1 = scmp.lt.s32.totalorder %s1139_s20, 3 }
   0x6   : > { %p190_p2 = pnand %p1070_p0, %p189_p1 }
   0x7   : > { %p216_p3 = scmp.lt.s32.totalorder (!%p190_p2), %s1066_s21, 1 }
   0x8   : > { %193 = sbr.rel (%p190_p2) target bundleno = 315 (0x13b), region = 40 }
   0xd   : > { %v1141_v1 = vmov 0   ;;  %s1488_s21 = smov (!%p216_p3, %s1066_s21), 1  ;;  %v234_v2 = vld [vmem:[%s1483_s2] sm:$0xff]  ;;  %v236_v3 = vld [vmem:[%s1483_s2 + $0x10] sm:$0xff]  ;;  %vm348_vm0 = vcmask 1043456   ;;  %v235_v19 = vld [vmem:[%s1483_s2 + $0x8] sm:$0xff] }
   0xe   : > { %405 = vmatprep.mubr.bf16.mxu0 %v1141_v1  ;;  %478 = vmatprep.mubr.bf16.mxu1 %v1141_v1  ;;  %s1108_s4 = sshll.u32 %s1488_s21, 5  ;;  %v1125_v18 = vld [vmem:[%s1482_s1] sm:$0xff]   ;;  %v237_v20 = vld [vmem:[%s1483_s2 + $0x18] sm:$0xff]  ;;  %vm335_vm1 = vcmask 64512   ;;  %v243_v24 = vld [vmem:[%s1484_s3 + $0x8] sm:$0xff]  ;;  %s1073_s16 = sshll.u32 %s1488_s21, 3 }
   0xf   : > { %1119 = vset.pattern.permute.xlu0 %v1141_v1  ;;  %1120 = vset.pattern.permute.xlu1 %v1141_v1  ;;  %s220_s28 = scalar_lea.vmem %s1481_s0, %s1108_s4  ;;  %v242_v23 = vld [vmem:[%s1484_s3] sm:$0xff]  ;;  %v1130_v25 = vld [vmem:[%s1482_s1 + $0x8] sm:$0xff]   ;;  %v244_v26 = vld [vmem:[%s1484_s3 + $0x10] sm:$0xff]  ;;  %s224_s19 = scalar_lea.vmem %s1486_s5, %s1073_s16 }
  0x10   : > { %257 = vperm.xlu0 %1119, %v234_v2   ;;  %267 = vperm.xlu1 %1120, %v236_v3   ;;  %v251_v4 = vld [vmem:[%s220_s28] sm:$0xff]  ;;  %v252_v5 = vld [vmem:[%s220_s28 + $0x8] sm:$0xff]  ;;  %v253_v6 = vld [vmem:[%s220_s28 + $0x10] sm:$0xff] }
  0x11   : > { %v1079_v7 = vcombine.high %v251_v4, %v251_v4  ;;  %v1081_v8 = vcombine.high %v252_v5, %v252_v5  ;;  %v1078_v9 = vcombine.low %v251_v4, %v251_v4  ;;  %v1080_v10 = vcombine.low %v252_v5, %v252_v5  ;;  %v254_v11 = vld [vmem:[%s220_s28 + $0x18] sm:$0xff]  ;;  %v238_v27 = vld [vmem:[%s1483_s2 + $0x20] sm:$0xff]  ;;  %v239_v29 = vld [vmem:[%s1483_s2 + $0x28] sm:$0xff] }
  0x12   : > { %v1083_v12 = vcombine.high %v253_v6, %v253_v6  ;;  %v1085_v13 = vcombine.high %v254_v11, %v254_v11  ;;  %v1082_v14 = vcombine.low %v253_v6, %v253_v6  ;;  %v1084_v15 = vcombine.low %v254_v11, %v254_v11  ;;  %v245_v28 = vld [vmem:[%s1484_s3 + $0x18] sm:$0xff]  ;;  %v1131_v30 = vld [vmem:[%s1482_s1 + $0x10] sm:$0xff]   ;;  %v246_v31 = vld [vmem:[%s1484_s3 + $0x20] sm:$0xff] }
  0x13   : > { %1086 = vmatprep.subr.msk.bf16.mxu0 %vm348_vm0, %v1079_v7  ;;  %1091 = vmatprep.subr.msk.bf16.mxu1 %vm348_vm0, %v1081_v8  ;;  %v350_v16 = vsel %vm348_vm0, %v1078_v9, 0  ;;  %v356_v17 = vsel %vm348_vm0, %v1080_v10, 0  ;;  %v240_v32 = vld [vmem:[%s1483_s2 + $0x30] sm:$0xff]  ;;  %v247_v33 = vld [vmem:[%s1484_s3 + $0x28] sm:$0xff]  ;;  %v241_v34 = vld [vmem:[%s1483_s2 + $0x38] sm:$0xff] }
  0x14   : > { %388 = vmatpush1.bf16.msra.mxu0 %v350_v16  ;;  %461 = vmatpush1.bf16.msra.mxu1 %v356_v17  ;;  %v362_v21 = vsel %vm348_vm0, %v1082_v14, 0  ;;  %v368_v22 = vsel %vm348_vm0, %v1084_v15, 0  ;;  %v1132_v35 = vld [vmem:[%s1482_s1 + $0x18] sm:$0xff]   ;;  %v248_v36 = vld [vmem:[%s1484_s3 + $0x30] sm:$0xff]  ;;  %v250_v38 = vld [vmem:[#allocation2] sm:$0x1] }
  0x15   : > { %1096 = vmatprep.subr.msk.bf16.mxu0 %vm348_vm0, %v1083_v12  ;;  %1101 = vmatprep.subr.msk.bf16.mxu1 %vm348_vm0, %v1085_v13  ;;  %v249_v37 = vld [vmem:[%s1484_s3 + $0x38] sm:$0xff] }
  0x16   : > { %262 = vperm.xlu0 %1119, %v235_v19   ;;  %272 = vperm.xlu1 %1120, %v237_v20  }
  0x17   : > { %1087 = vmatmul.mubr.msk.bf16.vlgmr.msra.gmra.mxu0 %vm335_vm1, %v1125_v18  ;;  %1092 = vmatmul.mubr.msk.bf16.vlgmr.msra.gmra.mxu1 %vm335_vm1, %v1125_v18 }
  0x18   : > { %534 = vmatpush1.bf16.msra.mxu0 %v362_v21  ;;  %607 = vmatpush1.bf16.msra.mxu1 %v368_v22 }
  0x19   : > { %415 = vmatprep.mubr.bf16.mxu0 %v1141_v1  ;;  %488 = vmatprep.mubr.bf16.mxu1 %v1141_v1 }
  0x1a   : > { %731 = vperm.xlu0 %1119, %v242_v23   ;;  %736 = vperm.xlu1 %1120, %v243_v24  }
  0x1e   : > { %741 = vperm.xlu1 %1120, %v244_v26   ;;  %277 = vperm.xlu0 %1119, %v238_v27  }
  0x1f   : > { %1088 = vmatmul.mubr.msk.bf16.gmra.mxu0 %vm335_vm1, %v1130_v25  ;;  %1093 = vmatmul.mubr.msk.bf16.gmra.mxu1 %vm335_vm1, %v1130_v25 }
  0x20   : > { %425 = vmatprep.mubr.bf16.mxu0 %v1141_v1  ;;  %498 = vmatprep.mubr.bf16.mxu1 %v1141_v1 }
  0x22   : > { %746 = vperm.xlu1 %1120, %v245_v28   ;;  %282 = vperm.xlu0 %1119, %v239_v29  }
  0x26   : > { %751 = vperm.xlu1 %1120, %v246_v31   ;;  %287 = vperm.xlu0 %1119, %v240_v32  }
  0x27   : > { %1089 = vmatmul.mubr.msk.bf16.gmra.mxu0 %vm335_vm1, %v1131_v30  ;;  %1094 = vmatmul.mubr.msk.bf16.gmra.mxu1 %vm335_vm1, %v1131_v30 }
  0x28   : > { %435 = vmatprep.mubr.bf16.mxu0 %v1141_v1  ;;  %508 = vmatprep.mubr.bf16.mxu1 %v1141_v1 }
  0x2a   : > { %756 = vperm.xlu1 %1120, %v247_v33   ;;  %292 = vperm.xlu0 %1119, %v241_v34  }
  0x2e   : > { %761 = vperm.xlu0 %1119, %v248_v36   ;;  %766 = vperm.xlu1 %1120, %v249_v37  }
  0x2f   : > { %1090 = vmatmul.mubr.msk.bf16.gmra.mxu0 %vm335_vm1, %v1132_v35  ;;  %1095 = vmatmul.mubr.msk.bf16.gmra.mxu1 %vm335_vm1, %v1132_v35 }
  0x30   : > { %551 = vmatprep.mubr.bf16.mxu0 %v1141_v1  ;;  %624 = vmatprep.mubr.bf16.mxu1 %v1141_v1 }
  0x32   : > { %939 = vperm.xlu0 %1119, %v250_v38  }
  0x37   : > { %1097 = vmatmul.mubr.msk.bf16.vlgmr.msra.gmra.mxu0 %vm335_vm1, %v1125_v18  ;;  %1102 = vmatmul.mubr.msk.bf16.vlgmr.msra.gmra.mxu1 %vm335_vm1, %v1125_v18 }
  0x38   : > { %561 = vmatprep.mubr.bf16.mxu0 %v1141_v1  ;;  %634 = vmatprep.mubr.bf16.mxu1 %v1141_v1 }
  0x3f   : > { %1098 = vmatmul.mubr.msk.bf16.gmra.mxu0 %vm335_vm1, %v1130_v25  ;;  %1103 = vmatmul.mubr.msk.bf16.gmra.mxu1 %vm335_vm1, %v1130_v25 }
  0x40   : > { %571 = vmatprep.mubr.bf16.mxu0 %v1141_v1  ;;  %644 = vmatprep.mubr.bf16.mxu1 %v1141_v1 }
  0x47   : > { %1099 = vmatmul.mubr.msk.bf16.gmra.mxu0 %vm335_vm1, %v1131_v30  ;;  %1104 = vmatmul.mubr.msk.bf16.gmra.mxu1 %vm335_vm1, %v1131_v30 }
  0x48   : > { %581 = vmatprep.mubr.bf16.mxu0 %v1141_v1  ;;  %654 = vmatprep.mubr.bf16.mxu1 %v1141_v1 }
  0x4f   : > { %1100 = vmatmul.mubr.msk.bf16.gmra.mxu0 %vm335_vm1, %v1132_v35  ;;  %1105 = vmatmul.mubr.msk.bf16.gmra.mxu1 %vm335_vm1, %v1132_v35 }
  0x8b   : > { %v1292_v39 = vpop.permute.xlu0 %257  ;;  %v1294_v40 = vpop.permute.xlu1 %267 }
  0x91   : > { %v1296_v41 = vpop.permute.xlu0 %262  ;;  %v1298_v42 = vpop.permute.xlu1 %272 }
  0x95   : > { %v1300_v43 = vpop.permute.xlu0 %731  ;;  %v1302_v46 = vpop.permute.xlu1 %736 }
  0x99   : > { %v1305_v50 = vpop.permute.xlu0 %277  ;;  %v1312_v62 = vpop.permute.xlu1 %741 }
  0x9d   : > { %v1318_v7 = vpop.permute.xlu0 %282  ;;  %v1328_v26 = vpop.permute.xlu1 %746 }
  0xa1   : > { %v1334_v37 = vpop.permute.xlu0 %287 }
  0xd7   : > { %v407_v44 = vpop.f32.mrf.mxu0  ;;  %v480_v45 = vpop.f32.mrf.mxu1 }
  0xd8   : > { %v408_v49 = vadd.f32 %v407_v44, %v1292_v39  ;;  %v481_v53 = vadd.f32 %v480_v45, %v1292_v39 }
  0xd9   : > { %v409_v47 = vpop.f32.mrf.mxu0  ;;  %v482_v48 = vpop.f32.mrf.mxu1 }
  0xda   : > { %v410_v56 = vadd.f32 %v409_v47, %v1292_v39  ;;  %v665_v59 = vmax.f32 %v408_v49, 0.0  ;;  %v483_v60 = vadd.f32 %v482_v48, %v1292_v39  ;;  %v667_v3 = vmax.f32 %v481_v53, 0.0 }
  0xdb   : > { %v411_v51 = vpop.f32.mrf.mxu0  ;;  %v484_v52 = vpop.f32.mrf.mxu1 }
  0xdc   : > { %v412_v54 = vadd.f32 %v411_v51, %v1296_v41  ;;  %v485_v55 = vadd.f32 %v484_v52, %v1296_v41  ;;  %v666_v8 = vmax.f32 %v410_v56, 0.0  ;;  %v668_v12 = vmax.f32 %v483_v60, 0.0 }
  0xdd   : > { %v413_v57 = vpop.f32.mrf.mxu0  ;;  %v486_v58 = vpop.f32.mrf.mxu1  ;;  %v769_v13 = vmul.f32 %v1300_v43, %v665_v59  ;;  %v771_v22 = vmul.f32 %v1300_v43, %v667_v3 }
  0xde   : > { %v673_v61 = vmax.f32 %v412_v54, 0.0  ;;  %v414_v63 = vadd.f32 %v413_v57, %v1296_v41  ;;  %v487_v0 = vadd.f32 %v486_v58, %v1296_v41  ;;  %v675_v4 = vmax.f32 %v485_v55, 0.0 }
  0xdf   : > { %v417_v1 = vpop.f32.mrf.mxu0  ;;  %v490_v2 = vpop.f32.mrf.mxu1  ;;  %v770_v27 = vmul.f32 %v1300_v43, %v666_v8  ;;  %v772_v33 = vmul.f32 %v1300_v43, %v668_v12 }
  0xe0   : > { %v418_v5 = vadd.f32 %v417_v1, %v1294_v40  ;;  %v491_v6 = vadd.f32 %v490_v2, %v1294_v40  ;;  %v674_v9 = vmax.f32 %v414_v63, 0.0  ;;  %v676_v14 = vmax.f32 %v487_v0, 0.0  ;;  %v1345_v2 = vpop.permute.xlu1 %751 }
  0xe1   : > { %v419_v10 = vpop.f32.mrf.mxu0  ;;  %v492_v11 = vpop.f32.mrf.mxu1  ;;  %v777_v15 = vmul.f32 %v1302_v46, %v673_v61  ;;  %v779_v23 = vmul.f32 %v1302_v46, %v675_v4 }
  0xe2   : > { %v681_v16 = vmax.f32 %v418_v5, 0.0  ;;  %v683_v17 = vmax.f32 %v491_v6, 0.0  ;;  %v420_v18 = vadd.f32 %v419_v10, %v1294_v40  ;;  %v493_v19 = vadd.f32 %v492_v11, %v1294_v40 }
  0xe3   : > { %v421_v20 = vpop.f32.mrf.mxu0  ;;  %v494_v21 = vpop.f32.mrf.mxu1  ;;  %v778_v28 = vmul.f32 %v1302_v46, %v674_v9  ;;  %v780_v34 = vmul.f32 %v1302_v46, %v676_v14  ;;  %v833_v35 = vadd.f32 %v777_v15, %v769_v13  ;;  %v859_v51 = vadd.f32 %v779_v23, %v771_v22 }
  0xe4   : > { %v422_v24 = vadd.f32 %v421_v20, %v1298_v42  ;;  %v495_v25 = vadd.f32 %v494_v21, %v1298_v42  ;;  %v682_v29 = vmax.f32 %v420_v18, 0.0  ;;  %v684_v30 = vmax.f32 %v493_v19, 0.0  ;;  %v1352_v14 = vpop.permute.xlu0 %292 }
  0xe5   : > { %v423_v31 = vpop.f32.mrf.mxu0  ;;  %v496_v32 = vpop.f32.mrf.mxu1  ;;  %v785_v38 = vmul.f32 %v1312_v62, %v681_v16  ;;  %v787_v44 = vmul.f32 %v1312_v62, %v683_v17  ;;  %v846_v55 = vadd.f32 %v778_v28, %v770_v27  ;;  %v872_v61 = vadd.f32 %v780_v34, %v772_v33 }
  0xe6   : > { %v689_v36 = vmax.f32 %v422_v24, 0.0  ;;  %v424_v45 = vadd.f32 %v423_v31, %v1298_v42  ;;  %v497_v47 = vadd.f32 %v496_v32, %v1298_v42  ;;  %v691_v52 = vmax.f32 %v495_v25, 0.0 }
  0xe7   : > { %v427_v48 = vpop.f32.mrf.mxu0  ;;  %v500_v49 = vpop.f32.mrf.mxu1  ;;  %v786_v56 = vmul.f32 %v1312_v62, %v682_v29  ;;  %v788_v57 = vmul.f32 %v1312_v62, %v684_v30  ;;  %v834_v3 = vadd.f32 %v833_v35, %v785_v38  ;;  %v860_v4 = vadd.f32 %v859_v51, %v787_v44 }
  0xe8   : > { %v428_v53 = vadd.f32 %v427_v48, %v1305_v50  ;;  %v501_v54 = vadd.f32 %v500_v49, %v1305_v50  ;;  %v690_v58 = vmax.f32 %v424_v45, 0.0  ;;  %v692_v63 = vmax.f32 %v497_v47, 0.0  ;;  %v1361_v35 = vpop.permute.xlu1 %756 }
  0xe9   : > { %v429_v59 = vpop.f32.mrf.mxu0  ;;  %v502_v60 = vpop.f32.mrf.mxu1  ;;  %v793_v0 = vmul.f32 %v1328_v26, %v689_v36  ;;  %v795_v10 = vmul.f32 %v1328_v26, %v691_v52  ;;  %v847_v15 = vadd.f32 %v846_v55, %v786_v56  ;;  %v873_v16 = vadd.f32 %v872_v61, %v788_v57 }
  0xea   : > { %v697_v1 = vmax.f32 %v428_v53, 0.0  ;;  %v430_v5 = vadd.f32 %v429_v59, %v1305_v50  ;;  %v503_v6 = vadd.f32 %v502_v60, %v1305_v50  ;;  %v699_v11 = vmax.f32 %v501_v54, 0.0  ;;  %v1367_v55 = vpop.permute.xlu0 %761 }
  0xeb   : > { %v431_v8 = vpop.f32.mrf.mxu0  ;;  %v504_v9 = vpop.f32.mrf.mxu1  ;;  %v794_v17 = vmul.f32 %v1328_v26, %v690_v58  ;;  %v796_v21 = vmul.f32 %v1328_v26, %v692_v63  ;;  %v835_v22 = vadd.f32 %v834_v3, %v793_v0  ;;  %v861_v32 = vadd.f32 %v860_v4, %v795_v10 }
  0xec   : > { %v432_v12 = vadd.f32 %v431_v8, %v1318_v7  ;;  %v505_v13 = vadd.f32 %v504_v9, %v1318_v7  ;;  %v698_v18 = vmax.f32 %v430_v5, 0.0  ;;  %v700_v23 = vmax.f32 %v503_v6, 0.0 }
  0xed   : > { %v433_v19 = vpop.f32.mrf.mxu0  ;;  %v506_v20 = vpop.f32.mrf.mxu1  ;;  %v801_v24 = vmul.f32 %v1345_v2, %v697_v1  ;;  %v803_v34 = vmul.f32 %v1345_v2, %v699_v11  ;;  %v848_v38 = vadd.f32 %v847_v15, %v794_v17  ;;  %v874_v51 = vadd.f32 %v873_v16, %v796_v21 }
  0xee   : > { %v705_v25 = vmax.f32 %v432_v12, 0.0  ;;  %v707_v27 = vmax.f32 %v505_v13, 0.0  ;;  %v434_v28 = vadd.f32 %v433_v19, %v1318_v7  ;;  %v507_v29 = vadd.f32 %v506_v20, %v1318_v7  ;;  %v1380_v16 = vpop.permute.xlu1 %766 }
  0xef   : > { %v437_v30 = vpop.f32.mrf.mxu0  ;;  %v510_v31 = vpop.f32.mrf.mxu1  ;;  %v802_v33 = vmul.f32 %v1345_v2, %v698_v18  ;;  %v804_v56 = vmul.f32 %v1345_v2, %v700_v23  ;;  %v836_v57 = vadd.f32 %v835_v22, %v801_v24 }
  0xf0   : > { %v438_v36 = vadd.f32 %v437_v30, %v1334_v37  ;;  %v706_v44 = vmax.f32 %v434_v28, 0.0  ;;  %v708_v45 = vmax.f32 %v507_v29, 0.0  ;;  %v511_v47 = vadd.f32 %v510_v31, %v1334_v37 }
  0xf1   : > { %v439_v48 = vpop.f32.mrf.mxu0  ;;  %v512_v49 = vpop.f32.mrf.mxu1  ;;  %v809_v58 = vmul.f32 %v1361_v35, %v705_v25  ;;  %v811_v59 = vmul.f32 %v1361_v35, %v707_v27  ;;  %v849_v63 = vadd.f32 %v848_v38, %v802_v33  ;;  %v875_v17 = vadd.f32 %v874_v51, %v804_v56 }
  0xf2   : > { %v713_v52 = vmax.f32 %v438_v36, 0.0  ;;  %v440_v53 = vadd.f32 %v439_v48, %v1334_v37  ;;  %v513_v54 = vadd.f32 %v512_v49, %v1334_v37  ;;  %v810_v0 = vmul.f32 %v1361_v35, %v706_v44 }
  0xf3   : > { %v441_v60 = vpop.f32.mrf.mxu0  ;;  %v514_v61 = vpop.f32.mrf.mxu1  ;;  %v812_v4 = vmul.f32 %v1361_v35, %v708_v45  ;;  %v715_v5 = vmax.f32 %v511_v47, 0.0  ;;  %v837_v25 = vadd.f32 %v836_v57, %v809_v58  ;;  %v862_v28 = vadd.f32 %v861_v32, %v803_v34 }
  0xf4   : > { %v714_v1 = vmax.f32 %v440_v53, 0.0  ;;  %v716_v3 = vmax.f32 %v513_v54, 0.0  ;;  %v442_v6 = vadd.f32 %v441_v60, %v1352_v14  ;;  %v515_v8 = vadd.f32 %v514_v61, %v1352_v14 }
  0xf5   : > { %v443_v9 = vpop.f32.mrf.mxu0  ;;  %v516_v10 = vpop.f32.mrf.mxu1  ;;  %v817_v11 = vmul.f32 %v1367_v55, %v713_v52  ;;  %v850_v27 = vadd.f32 %v849_v63, %v810_v0  ;;  %v819_v29 = vmul.f32 %v1367_v55, %v715_v5  ;;  %v876_v31 = vadd.f32 %v875_v17, %v812_v4 }
  0xf6   : > { %v818_v12 = vmul.f32 %v1367_v55, %v714_v1  ;;  %v444_v13 = vadd.f32 %v443_v9, %v1352_v14  ;;  %v517_v15 = vadd.f32 %v516_v10, %v1352_v14  ;;  %v820_v18 = vmul.f32 %v1367_v55, %v716_v3 }
  0xf7   : > { %v721_v19 = vmax.f32 %v442_v6, 0.0  ;;  %v723_v20 = vmax.f32 %v515_v8, 0.0  ;;  %v553_v21 = vpop.f32.mrf.mxu0  ;;  %v626_v22 = vpop.f32.mrf.mxu1  ;;  %v838_v45 = vadd.f32 %v837_v25, %v817_v11  ;;  %v863_v49 = vadd.f32 %v862_v28, %v811_v59 }
  0xf8   : > { %v722_v23 = vmax.f32 %v444_v13, 0.0  ;;  %v724_v24 = vmax.f32 %v517_v15, 0.0  ;;  %v851_v47 = vadd.f32 %v850_v27, %v818_v12  ;;  %v877_v51 = vadd.f32 %v876_v31, %v820_v18 }
  0xf9   : > { %v825_v30 = vmul.f32 %v1380_v16, %v721_v19  ;;  %v555_v33 = vpop.f32.mrf.mxu0  ;;  %v628_v36 = vpop.f32.mrf.mxu1  ;;  %v827_v48 = vmul.f32 %v1380_v16, %v723_v20  ;;  %v864_v54 = vadd.f32 %v863_v49, %v819_v29  ;;  %v554_v57 = vadd.f32 %v553_v21, %v1292_v39 }
  0xfa   : > { %v826_v38 = vmul.f32 %v1380_v16, %v722_v23  ;;  %v828_v44 = vmul.f32 %v1380_v16, %v724_v24  ;;  %v627_v61 = vadd.f32 %v626_v22, %v1292_v39  ;;  %v556_v0 = vadd.f32 %v555_v33, %v1292_v39 }
  0xfb   : > { %v557_v52 = vpop.f32.mrf.mxu0  ;;  %v630_v53 = vpop.f32.mrf.mxu1  ;;  %v839_v32 = vadd.f32 %v838_v45, %v825_v30  ;;  %v865_v63 = vadd.f32 %v864_v54, %v827_v48  ;;  %v942_v5 = vlaneseq  ;;  %v669_v8 = vmax.f32 %v554_v57, 0.0 }
  0xfc   : > { %v852_v34 = vadd.f32 %v851_v47, %v826_v38  ;;  %v878_v56 = vadd.f32 %v877_v51, %v828_v44  ;;  %v629_v9 = vadd.f32 %v628_v36, %v1292_v39  ;;  %v558_v10 = vadd.f32 %v557_v52, %v1296_v41 }
  0xfd   : > { %v559_v58 = vpop.f32.mrf.mxu0  ;;  %v632_v60 = vpop.f32.mrf.mxu1  ;;  %v840_v4 = vrot.slane %v839_v32, 4  ;;  %v671_v13 = vmax.f32 %v627_v61, 0.0  ;;  %v631_v15 = vadd.f32 %v630_v53, %v1296_v41  ;;  %v866_v19 = vrot.slane %v865_v63, 4 }
  0xfe   : > { %v853_v59 = vrot.slane %v852_v34, 4  ;;  %v879_v6 = vrot.slane %v878_v56, 4  ;;  %v560_v17 = vadd.f32 %v559_v58, %v1296_v41  ;;  %v633_v18 = vadd.f32 %v632_v60, %v1296_v41 }
  0xff   : > { %v563_v1 = vpop.f32.mrf.mxu0  ;;  %v636_v3 = vpop.f32.mrf.mxu1  ;;  %v670_v20 = vmax.f32 %v556_v0, 0.0  ;;  %v841_v23 = vadd.f32 %v840_v4, %v839_v32  ;;  %v1396_v25 = vshrl.u32 %v942_v5, 7  ;;  %v773_v27 = vmul.f32 %v1300_v43, %v669_v8 }
 0x100   : > { %v854_v24 = vadd.f32 %v853_v59, %v852_v34  ;;  %v880_v39 = vadd.f32 %v879_v6, %v878_v56  ;;  %v672_v28 = vmax.f32 %v629_v9, 0.0  ;;  %v677_v29 = vmax.f32 %v558_v10, 0.0 }
 0x101   : > { %v565_v11 = vpop.f32.mrf.mxu0  ;;  %v638_v12 = vpop.f32.mrf.mxu1  ;;  %v775_v33 = vmul.f32 %v1300_v43, %v671_v13  ;;  %v679_v36 = vmax.f32 %v631_v15, 0.0  ;;  %v678_v38 = vmax.f32 %v560_v17, 0.0  ;;  %v680_v41 = vmax.f32 %v633_v18, 0.0 }
 0x102   : > { %v1400_v44 = vadd.f32 %v866_v19, %v865_v63  ;;  %v774_v45 = vmul.f32 %v1300_v43, %v670_v20  ;;  %v564_v47 = vadd.f32 %v563_v1, %v1294_v40  ;;  %v637_v48 = vadd.f32 %v636_v3, %v1294_v40 }
 0x103   : > { %v567_v21 = vpop.f32.mrf.mxu0  ;;  %v640_v22 = vpop.f32.mrf.mxu1  ;;  %v842_v52 = vrot.slane %v841_v23, 2  ;;  %v855_v53 = vrot.slane %v854_v24, 2  ;;  %v566_v32 = vadd.f32 %v565_v11, %v1294_v40  ;;  %v639_v34 = vadd.f32 %v638_v12, %v1294_v40 }
 0x104   : > { %v881_v54 = vrot.slane %v880_v39, 2  ;;  %v781_v56 = vmul.f32 %v1302_v46, %v677_v29  ;;  %v685_v57 = vmax.f32 %v564_v47, 0.0  ;;  %v687_v58 = vmax.f32 %v637_v48, 0.0 }
 0x105   : > { %v569_v30 = vpop.f32.mrf.mxu0  ;;  %v642_v31 = vpop.f32.mrf.mxu1  ;;  %v776_v63 = vmul.f32 %v1300_v43, %v672_v28  ;;  %v783_v0 = vmul.f32 %v1302_v46, %v679_v36  ;;  %v782_v1 = vmul.f32 %v1302_v46, %v678_v38  ;;  %v784_v3 = vmul.f32 %v1302_v46, %v680_v41 }
 0x106   : > { %v686_v4 = vmax.f32 %v566_v32, 0.0  ;;  %v688_v59 = vmax.f32 %v639_v34, 0.0  ;;  %v568_v5 = vadd.f32 %v567_v21, %v1298_v42  ;;  %v641_v40 = vadd.f32 %v640_v22, %v1298_v42 }
 0x107   : > { %v573_v49 = vpop.f32.mrf.mxu0  ;;  %v646_v51 = vpop.f32.mrf.mxu1  ;;  %v1414_v9 = vadd.f32 %v842_v52, %v841_v23  ;;  %v1416_v10 = vadd.f32 %v855_v53, %v854_v24  ;;  %v868_v43 = vrot.slane %v1400_v44, 2  ;;  %v789_v11 = vmul.f32 %v1312_v62, %v685_v57 }
 0x108   : > { %v1420_v12 = vadd.f32 %v881_v54, %v880_v39  ;;  %v885_v13 = vadd.f32 %v781_v56, %v773_v27  ;;  %v791_v46 = vmul.f32 %v1312_v62, %v687_v58  ;;  %v693_v15 = vmax.f32 %v568_v5, 0.0 }
 0x109   : > { %v575_v60 = vpop.f32.mrf.mxu0  ;;  %v648_v61 = vpop.f32.mrf.mxu1  ;;  %v911_v19 = vadd.f32 %v783_v0, %v775_v33  ;;  %v898_v20 = vadd.f32 %v782_v1, %v774_v45  ;;  %v924_v21 = vadd.f32 %v784_v3, %v776_v63  ;;  %v695_v22 = vmax.f32 %v641_v40, 0.0 }
 0x10a   : > { %v790_v23 = vmul.f32 %v1312_v62, %v686_v4  ;;  %v792_v24 = vmul.f32 %v1312_v62, %v688_v59  ;;  %v570_v28 = vadd.f32 %v569_v30, %v1298_v42  ;;  %v643_v29 = vadd.f32 %v642_v31, %v1298_v42 }
 0x10b   : > { %v577_v6 = vpop.f32.mrf.mxu0  ;;  %v650_v8 = vpop.f32.mrf.mxu1  ;;  %v886_v36 = vadd.f32 %v885_v13, %v789_v11  ;;  %v574_v27 = vadd.f32 %v573_v49, %v1305_v50  ;;  %v647_v38 = vadd.f32 %v646_v51, %v1305_v50  ;;  %v576_v41 = vadd.f32 %v575_v60, %v1305_v50 }
 0x10c   : > { %v912_v45 = vadd.f32 %v911_v19, %v791_v46  ;;  %v797_v47 = vmul.f32 %v1328_v26, %v693_v15  ;;  %v694_v48 = vmax.f32 %v570_v28, 0.0  ;;  %v696_v52 = vmax.f32 %v643_v29, 0.0 }
 0x10d   : > { %v579_v17 = vpop.f32.mrf.mxu0  ;;  %v652_v18 = vpop.f32.mrf.mxu1  ;;  %v799_v62 = vmul.f32 %v1328_v26, %v695_v22  ;;  %v701_v53 = vmax.f32 %v574_v27, 0.0  ;;  %v703_v30 = vmax.f32 %v647_v38, 0.0  ;;  %v702_v32 = vmax.f32 %v576_v41, 0.0 }
 0x10e   : > { %v798_v42 = vmul.f32 %v1328_v26, %v694_v48  ;;  %v800_v31 = vmul.f32 %v1328_v26, %v696_v52  ;;  %v649_v49 = vadd.f32 %v648_v61, %v1305_v50  ;;  %v578_v51 = vadd.f32 %v577_v6, %v1318_v7 }
 0x10f   : > { %v583_v39 = vpop.f32.mrf.mxu0  ;;  %v656_v33 = vpop.f32.mrf.mxu1  ;;  %v899_v54 = vadd.f32 %v898_v20, %v790_v23  ;;  %v925_v56 = vadd.f32 %v924_v21, %v792_v24  ;;  %v805_v57 = vmul.f32 %v1345_v2, %v701_v53  ;;  %v651_v58 = vadd.f32 %v650_v8, %v1318_v7 }
 0x110   : > { %v887_v63 = vadd.f32 %v886_v36, %v797_v47  ;;  %v807_v0 = vmul.f32 %v1345_v2, %v703_v30  ;;  %v704_v1 = vmax.f32 %v649_v49, 0.0  ;;  %v709_v3 = vmax.f32 %v578_v51, 0.0 }
 0x111   : > { %v585_v34 = vpop.f32.mrf.mxu0  ;;  %v658_v60 = vpop.f32.mrf.mxu1  ;;  %v913_v4 = vadd.f32 %v912_v45, %v799_v62  ;;  %v806_v26 = vmul.f32 %v1345_v2, %v702_v32  ;;  %v711_v59 = vmax.f32 %v651_v58, 0.0  ;;  %v580_v50 = vadd.f32 %v579_v17, %v1318_v7 }
 0x112   : > { %v900_v61 = vadd.f32 %v899_v54, %v798_v42  ;;  %v926_v5 = vadd.f32 %v925_v56, %v800_v31  ;;  %v808_v40 = vmul.f32 %v1345_v2, %v704_v1  ;;  %v653_v6 = vadd.f32 %v652_v18, %v1318_v7 }
 0x113   : > { %v587_v11 = vpop.f32.mrf.mxu0  ;;  %v888_v8 = vadd.f32 %v887_v63, %v805_v57  ;;  %v710_v13 = vmax.f32 %v580_v50, 0.0  ;;  %v584_v46 = vadd.f32 %v583_v39, %v1334_v37  ;;  %v657_v15 = vadd.f32 %v656_v33, %v1334_v37  ;;  %v660_v19 = vpop.f32.mrf.mxu1 }
 0x114   : > { %v914_v20 = vadd.f32 %v913_v4, %v807_v0  ;;  %v813_v21 = vmul.f32 %v1361_v35, %v709_v3  ;;  %v712_v22 = vmax.f32 %v653_v6, 0.0  ;;  %v586_v17 = vadd.f32 %v585_v34, %v1334_v37 }
 0x115   : > { %v901_v23 = vadd.f32 %v900_v61, %v806_v26  ;;  %v815_v24 = vmul.f32 %v1361_v35, %v711_v59  ;;  %v717_v2 = vmax.f32 %v584_v46, 0.0  ;;  %v719_v28 = vmax.f32 %v657_v15, 0.0  ;;  %v589_v36 = vpop.f32.mrf.mxu0  ;;  %v662_v45 = vpop.f32.mrf.mxu1 }
 0x116   : > { %v927_v7 = vadd.f32 %v926_v5, %v808_v40  ;;  %v718_v18 = vmax.f32 %v586_v17, 0.0  ;;  %v659_v29 = vadd.f32 %v658_v60, %v1334_v37  ;;  %v588_v39 = vadd.f32 %v587_v11, %v1352_v14  ;;  %v940_v40 = vpop.permute.xlu0 %939 }
 0x117   : > { %v814_v27 = vmul.f32 %v1361_v35, %v710_v13  ;;  %v821_v38 = vmul.f32 %v1367_v55, %v717_v2  ;;  %v823_v41 = vmul.f32 %v1367_v55, %v719_v28  ;;  %v661_v33 = vadd.f32 %v660_v19, %v1352_v14 }
 0x118   : > { %v889_v47 = vadd.f32 %v888_v8, %v813_v21  ;;  %v816_v48 = vmul.f32 %v1361_v35, %v712_v22  ;;  %v720_v52 = vmax.f32 %v659_v29, 0.0  ;;  %v725_v62 = vmax.f32 %v588_v39, 0.0 }
 0x119   : > { %v915_v53 = vadd.f32 %v914_v20, %v815_v24  ;;  %v822_v37 = vmul.f32 %v1367_v55, %v718_v18  ;;  %v727_v30 = vmax.f32 %v661_v33, 0.0  ;;  %v590_v32 = vadd.f32 %v589_v36, %v1352_v14 }
 0x11a   : > { %v890_v42 = vadd.f32 %v889_v47, %v821_v38  ;;  %v824_v31 = vmul.f32 %v1367_v55, %v720_v52  ;;  %v829_v49 = vmul.f32 %v1380_v16, %v725_v62  ;;  %v663_v51 = vadd.f32 %v662_v45, %v1352_v14 }
 0x11b   : > { %v902_v34 = vadd.f32 %v901_v23, %v814_v27  ;;  %v916_v54 = vadd.f32 %v915_v53, %v823_v41  ;;  %v831_v56 = vmul.f32 %v1380_v16, %v727_v30  ;;  %v726_v35 = vmax.f32 %v590_v32, 0.0 }
 0x11c   : > { %v869_v57 = vadd.f32 %v868_v43, %v1400_v44  ;;  %v928_v58 = vadd.f32 %v927_v7, %v816_v48  ;;  %v891_v60 = vadd.f32 %v890_v42, %v829_v49  ;;  %v728_v63 = vmax.f32 %v663_v51, 0.0 }
 0x11d   : > { %v857_v0 = vrot.slane %v1416_v10, 1  ;;  %v903_v1 = vadd.f32 %v902_v34, %v822_v37  ;;  %v917_v55 = vadd.f32 %v916_v54, %v831_v56  ;;  %v830_v3 = vmul.f32 %v1380_v16, %v726_v35 }
 0x11e   : > { %v883_v14 = vrot.slane %v1420_v12, 1  ;;  %v929_v4 = vadd.f32 %v928_v58, %v824_v31  ;;  %v892_v26 = vrot.slane %v891_v60, 4  ;;  %v832_v59 = vmul.f32 %v1380_v16, %v728_v63 }
 0x11f   : > { %v944_v50 = vsub.s32 0, %v1396_v25  ;;  %v918_v61 = vrot.slane %v917_v55, 4  ;;  %v904_v5 = vadd.f32 %v903_v1, %v830_v3  ;;  %v844_v44 = vrot.slane %v1414_v9, 1 }
 0x120   : > { %v870_v43 = vrot.slane %v869_v57, 1  ;;  %v893_v6 = vadd.f32 %v892_v26, %v891_v60  ;;  %v930_v11 = vadd.f32 %v929_v4, %v832_v59  ;;  %v1142_v8 = vmov 1966171168  }
 0x121   : > { %v967_v13 = vunpack.c.l.s4 %v1142_v8  ;;  %v919_v46 = vadd.f32 %v918_v61, %v917_v55  ;;  %v905_v15 = vrot.slane %v904_v5, 4  ;;  %v858_v19 = vadd.f32 %v857_v0, %v1416_v10 }
 0x122   : > { %v884_v20 = vadd.f32 %v883_v14, %v1420_v12  ;;  %v894_v21 = vrot.slane %v893_v6, 2  ;;  %v931_v16 = vrot.slane %v930_v11, 4  ;;  %v945_v22 = vrot.slane %v940_v40, %v944_v50 }
 0x123   : > { %v920_v17 = vrot.slane %v919_v46, 2  ;;  %v906_v23 = vadd.f32 %v905_v15, %v904_v5  ;;  %v845_v24 = vadd.f32 %v844_v44, %v1414_v9  ;;  %v871_v2 = vadd.f32 %v870_v43, %v869_v57 }
 0x124   : > { %v895_v28 = vadd.f32 %v894_v21, %v893_v6  ;;  %v932_v7 = vadd.f32 %v931_v16, %v930_v11  ;;  %v968_v18 = vunpack.c.0.s8 %v967_v13  ;;  %v947_v36 = vadd.f32 %v945_v22, %v858_v19 }
 0x125   : > { %v921_v29 = vadd.f32 %v920_v17, %v919_v46  ;;  %v907_v39 = vrot.slane %v906_v23, 2  ;;  %v949_v27 = vadd.f32 %v945_v22, %v884_v20  ;;  %v946_v12 = vadd.f32 %v945_v22, %v845_v24 }
 0x126   : > { %v896_v38 = vrot.slane %v895_v28, 1  ;;  %v933_v41 = vrot.slane %v932_v7, 2  ;;  %v948_v45 = vadd.f32 %v945_v22, %v871_v2  ;;  %v971_v48 = vsub.s32 %v968_v18, %v1396_v25 }
 0x127   : > { %v922_v10 = vrot.slane %v921_v29, 1  ;;  %v908_v33 = vadd.f32 %v907_v39, %v906_v23  ;;  %v962_v9 = vcombine.low %v946_v12, %v947_v36 }
 0x128   : > { %v934_v47 = vadd.f32 %v933_v41, %v932_v7  ;;  %v897_v52 = vadd.f32 %v896_v38, %v895_v28  ;;  %v963_v53 = vcombine.low %v948_v45, %v949_v27 }
 0x129   : > { %v909_v62 = vrot.slane %v908_v33, 1  ;;  %v923_v37 = vadd.f32 %v922_v10, %v921_v29  ;;  %v972_v51 = vrot.slane %v962_v9, %v971_v48 }
 0x12a   : > { %v935_v30 = vrot.slane %v934_v47, 1  ;;  %v950_v31 = vadd.f32 %v945_v22, %v897_v52  ;;  %v979_v34 = vrot.slane %v963_v53, %v971_v48 }
 0x12b   : > { %v910_v32 = vadd.f32 %v909_v62, %v908_v33  ;;  %v952_v54 = vadd.f32 %v945_v22, %v923_v37 }
 0x12c   : > { %v936_v42 = vadd.f32 %v935_v30, %v934_v47  ;;  %v994_v60 = vcombine.low %v972_v51, %v979_v34 }
 0x12d   : > { %v951_v49 = vadd.f32 %v945_v22, %v910_v32 }
 0x12e   : > { %v953_v56 = vadd.f32 %v945_v22, %v936_v42  ;;  %v1002_v0 = vrot.slane %v994_v60, %v971_v48 }
 0x12f   : > { %v964_v35 = vcombine.low %v950_v31, %v951_v49 }
 0x130   : > { %v965_v57 = vcombine.low %v952_v54, %v953_v56 }
 0x131   : > { %v986_v58 = vrot.slane %v964_v35, %v971_v48 }
 0x132   : > { %v993_v25 = vrot.slane %v965_v57, %v971_v48 }
 0x134   : > { %v995_v63 = vcombine.low %v986_v58, %v993_v25 }
 0x136   : > { %v1009_v1 = vrot.slane %v995_v63, %v971_v48 }
 0x138   : > { %v1010_v55 = vcombine.low %v1002_v0, %v1009_v1 }
 0x13a   : > { %1012 = vst [vmem:[%s224_s19] sm:$0xff] %v1010_v55 }
 0x13b PF: > { %s17_s20 = sadd.s32 1, %s1139_s20  }
 0x13c   : > { %p14_p4 = scmp.ge.s32.totalorder %s17_s20, 4  }
 0x13e   :  { %16 = sbr.rel (!%p14_p4) target bundleno = 3 (0x3), region = 70 }

</bundles_post_ra>
